<compile_context>
chip_gen: v6e
topology: v6e:2x2x1
jax: 0.10.0
libtpu: 0.0.40
codegen_flags: <defaults>
</compile_context>

<pallas_src>
import jax
import jax.numpy as jnp
from jax.experimental import pallas as pl
from jax.experimental.pallas import tpu as pltpu


def _round_up(x, m):
    return (x + m - 1) // m * m


def _tdnn_matmul_kernel(x_ref, w_ref, p_ref, o_ref):
    """Fused (im2col'd Conv1d) matmul + ReLU + folded-BatchNorm epilogue.

    x_ref: (tile_m, K_p)      compute dtype (bf16/f32); K_p = padded context*in
    w_ref: (K_p, tile_n)      compute dtype
    p_ref: (3, tile_n) f32    rows = [conv_bias, bn_scale, bn_shift]
    o_ref: (tile_m, tile_n)   output dtype (f32)
    """
    acc = jnp.dot(x_ref[...], w_ref[...], preferred_element_type=jnp.float32)
    bias = p_ref[0:1, :]
    scale = p_ref[1:2, :]
    shift = p_ref[2:3, :]
    y = jnp.maximum(acc + bias, 0.0)                       # conv bias + ReLU
    o_ref[...] = (y * scale + shift).astype(o_ref.dtype)   # BN (eval, folded)


def time_delay_layer(x, weight, bias, bn_gamma, bn_beta, bn_mean, bn_var,
                     *, context_size, stride=1, dilation=1, padding=0,
                     eps=1e-5, compute_dtype=jnp.bfloat16, tile_m=512):
    """x: (batch, seq_len, input_dim) -> (batch, new_seq_len, output_dim).

    weight: (context_size, input_dim, output_dim)  (PyTorch Conv1d weight, transposed)
    bias / bn_*: (output_dim,)
    """
    out_dtype = x.dtype
    batch, _, in_dim = x.shape
    assert weight.shape[0] == context_size and weight.shape[1] == in_dim
    out_dim = weight.shape[-1]

    if padding > 0:
        x = jnp.pad(x, ((0, 0), (padding, padding), (0, 0)))
    seq_p = x.shape[1]
    out_len = (seq_p - dilation * (context_size - 1) - 1) // stride + 1
    assert out_len > 0, "sequence too short for the given context/dilation"

    # --- im2col: merge the context taps into the contraction dim (K) ---------
    span = (out_len - 1) * stride + 1
    taps = [x[:, k * dilation: k * dilation + span: stride, :]
            for k in range(context_size)]
    x_cat = jnp.concatenate(taps, axis=-1).astype(compute_dtype)   # (B, T, C*in)
    K = context_size * in_dim
    K_p = _round_up(K, 128)                 # lane-align the contraction axis

    # --- flatten batch*time into M and tile it -------------------------------
    M = batch * out_len
    x_flat = x_cat.reshape(M, K)
    tile_m = max(8, _round_up(min(tile_m, M), 8))
    M_p = _round_up(M, tile_m)
    if (M_p, K_p) != (M, K):
        x_flat = jnp.pad(x_flat, ((0, M_p - M), (0, K_p - K)))

    # --- lane-dense N: pad output_dim to a multiple of 128, pick tile_n ------
    out_dim_p = _round_up(out_dim, 128)
    if out_dim_p <= 512:
        tile_n = out_dim_p
    elif out_dim_p % 512 == 0:
        tile_n = 512
    elif out_dim_p % 256 == 0:
        tile_n = 256
    else:
        tile_n = 128

    w2 = weight.reshape(K, out_dim)
    if (K_p, out_dim_p) != (K, out_dim):
        w2 = jnp.pad(w2, ((0, K_p - K), (0, out_dim_p - out_dim)))
    w2 = w2.astype(compute_dtype)

    # Fold BatchNorm1d (eval mode) into a per-channel affine applied after ReLU.
    scale = bn_gamma / jnp.sqrt(bn_var + eps)
    shift = bn_beta - bn_mean * scale
    params = jnp.stack([bias, scale, shift], axis=0).astype(jnp.float32)  # (3, out)
    if out_dim_p != out_dim:
        params = jnp.pad(params, ((0, 0), (0, out_dim_p - out_dim)))

    grid = (M_p // tile_m, out_dim_p // tile_n)

    itemsize = jnp.dtype(compute_dtype).itemsize
    cost = pl.CostEstimate(
        flops=2 * M_p * K_p * out_dim_p,
        transcendentals=0,
        bytes_accessed=(M_p * K_p * itemsize
                        + K_p * out_dim_p * itemsize
                        + 3 * out_dim_p * 4
                        + M_p * out_dim_p * jnp.dtype(out_dtype).itemsize))

    out_flat = pl.pallas_call(
        _tdnn_matmul_kernel,
        out_shape=jax.ShapeDtypeStruct((M_p, out_dim_p), out_dtype),
        grid_spec=pltpu.PrefetchScalarGridSpec(
            num_scalar_prefetch=0,
            grid=grid,
            in_specs=[
                pl.BlockSpec((tile_m, K_p), lambda i, j: (i, 0)),
                pl.BlockSpec((K_p, tile_n), lambda i, j: (0, j)),
                pl.BlockSpec((3, tile_n), lambda i, j: (0, j)),
            ],
            out_specs=pl.BlockSpec((tile_m, tile_n), lambda i, j: (i, j)),
        ),
        compiler_params=pltpu.CompilerParams(
            dimension_semantics=("parallel", "parallel")),
        cost_estimate=cost,
    )(x_flat, w2, params)

    return out_flat[:M, :out_dim].reshape(batch, out_len, out_dim)


def _reference(x, weight, bias, bn_gamma, bn_beta, bn_mean, bn_var,
               *, context_size, stride, dilation, padding, eps=1e-5,
               compute_dtype=jnp.bfloat16):
    """Plain-JAX reference mirroring Conv1d -> ReLU -> BatchNorm1d (eval)."""
    if padding > 0:
        x = jnp.pad(x, ((0, 0), (padding, padding), (0, 0)))
    s = x.shape[1]
    out_len = (s - dilation * (context_size - 1) - 1) // stride + 1
    span = (out_len - 1) * stride + 1
    taps = [x[:, k * dilation: k * dilation + span: stride, :].astype(compute_dtype)
            for k in range(context_size)]
    wc = weight.astype(compute_dtype)
    y = sum(jnp.einsum("bti,io->bto", taps[k], wc[k],
                       preferred_element_type=jnp.float32)
            for k in range(context_size))
    y = jnp.maximum(y + bias[None, None, :], 0.0)
    scale = bn_gamma / jnp.sqrt(bn_var + eps)
    shift = bn_beta - bn_mean * scale
    return y * scale[None, None, :] + shift[None, None, :]


def _run_case(key, *, batch, seq_len, in_dim, out_dim, context_size,
              stride, dilation, padding, tol):
    kx, kw, kb, kg, kbeta, km, kv = jax.random.split(key, 7)
    x = jax.random.normal(kx, (batch, seq_len, in_dim), dtype=jnp.float32)

    # Conv1d weight: PyTorch shape (out, in, k); stored here as (k, in, out).
    fan_in = in_dim * context_size
    bound = 1.0 / (fan_in ** 0.5)
    weight = jax.random.uniform(kw, (context_size, in_dim, out_dim),
                                minval=-bound, maxval=bound, dtype=jnp.float32)
    bias = jax.random.uniform(kb, (out_dim,), minval=-bound, maxval=bound,
                              dtype=jnp.float32)

    # BatchNorm1d (eval) parameters — randomized to exercise the folded affine.
    bn_gamma = 1.0 + 0.1 * jax.random.normal(kg, (out_dim,), dtype=jnp.float32)
    bn_beta = 0.1 * jax.random.normal(kbeta, (out_dim,), dtype=jnp.float32)
    bn_mean = 0.1 * jax.random.normal(km, (out_dim,), dtype=jnp.float32)
    bn_var = jax.random.uniform(kv, (out_dim,), minval=0.5, maxval=1.5,
                                dtype=jnp.float32)

    out = time_delay_layer(
        x, weight, bias, bn_gamma, bn_beta, bn_mean, bn_var,
        context_size=context_size, stride=stride, dilation=dilation,
        padding=padding)
    out = jax.block_until_ready(out)

    ref = _reference(
        x, weight, bias, bn_gamma, bn_beta, bn_mean, bn_var,
        context_size=context_size, stride=stride, dilation=dilation,
        padding=padding)

    expected_len = (seq_len + 2 * padding
                    - dilation * (context_size - 1) - 1) // stride + 1
    assert out.shape == (batch, expected_len, out_dim), out.shape
    max_diff = float(jnp.max(jnp.abs(out - ref)))
    assert jnp.allclose(out, ref, atol=tol, rtol=tol), f"mismatch: {max_diff}"


if __name__ == "__main__":
    key = jax.random.PRNGKey(0)
    k1, k2 = jax.random.split(key)

    # Module-default-ish small config (input_dim=23, context=5, stride=1).
    _run_case(k1, batch=2, seq_len=32, in_dim=23, out_dim=64,
              context_size=5, stride=1, dilation=1, padding=0, tol=2e-3)

    # Exercise stride / dilation / padding and the out_dim->128 lane padding.
    _run_case(k2, batch=3, seq_len=40, in_dim=16, out_dim=40,
              context_size=3, stride=2, dilation=2, padding=2, tol=2e-3)

    print("KERNEL_OK")
</pallas_src>

<mosaic_0001>
module attributes {stable_mosaic.version = 11 : i64} {
  func.func @_tdnn_matmul_kernel(%arg0: i32, %arg1: i32, %arg2: memref<56x128xbf16, #tpu.memory_space<vmem>>, %arg3: memref<128x128xbf16, #tpu.memory_space<vmem>>, %arg4: memref<3x128xf32, #tpu.memory_space<vmem>>, %arg5: memref<56x128xf32, #tpu.memory_space<vmem>>) attributes {dimension_semantics = [#tpu.dimension_semantics<parallel>, #tpu.dimension_semantics<parallel>], iteration_bounds = array<i64: 1, 1>, scalar_prefetch = 0 : i64, scratch_operands = 0 : i64, tpu.core_type = #tpu.core_type<tc>, window_params = [{transform_indices = @transform_0, window_bounds = array<i64: 56, 128>}, {transform_indices = @transform_1, window_bounds = array<i64: 128, 128>}, {transform_indices = @transform_2, window_bounds = array<i64: 3, 128>}, {transform_indices = @transform_3, window_bounds = array<i64: 56, 128>}]} {
    %c0 = arith.constant 0 : index
    %c0_0 = arith.constant 0 : index
    %0 = vector.load %arg2[%c0, %c0_0] : memref<56x128xbf16, #tpu.memory_space<vmem>>, vector<56x128xbf16>
    %c0_1 = arith.constant 0 : index
    %c0_2 = arith.constant 0 : index
    %1 = vector.load %arg3[%c0_1, %c0_2] : memref<128x128xbf16, #tpu.memory_space<vmem>>, vector<128x128xbf16>
    %cst = arith.constant dense<0.000000e+00> : vector<56x128xf32>
    %2 = tpu.matmul %0, %1, %cst {dimension_numbers = #tpu.dot_dimension_numbers<[1], [0], [0], [1], [0, 0, 1, 1], [], []>} : vector<56x128xbf16>, vector<128x128xbf16>, vector<56x128xf32> -> vector<56x128xf32>
    %c0_3 = arith.constant 0 : index
    %c0_4 = arith.constant 0 : index
    %3 = vector.load %arg4[%c0_3, %c0_4] : memref<3x128xf32, #tpu.memory_space<vmem>>, vector<1x128xf32>
    %c1 = arith.constant 1 : index
    %c0_5 = arith.constant 0 : index
    %4 = vector.load %arg4[%c1, %c0_5] : memref<3x128xf32, #tpu.memory_space<vmem>>, vector<1x128xf32>
    %c2 = arith.constant 2 : index
    %c0_6 = arith.constant 0 : index
    %5 = vector.load %arg4[%c2, %c0_6] : memref<3x128xf32, #tpu.memory_space<vmem>>, vector<1x128xf32>
    %6 = vector.broadcast %3 : vector<1x128xf32> to vector<56x128xf32>
    %7 = arith.addf %2, %6 : vector<56x128xf32>
    %cst_7 = arith.constant 0.000000e+00 : f32
    %8 = vector.broadcast %cst_7 : f32 to vector<56x128xf32>
    %9 = arith.maximumf %7, %8 : vector<56x128xf32>
    %10 = vector.broadcast %4 : vector<1x128xf32> to vector<56x128xf32>
    %11 = arith.mulf %9, %10 : vector<56x128xf32>
    %12 = vector.broadcast %5 : vector<1x128xf32> to vector<56x128xf32>
    %13 = arith.addf %11, %12 : vector<56x128xf32>
    %c0_8 = arith.constant 0 : index
    %c0_9 = arith.constant 0 : index
    %14 = vector.load %arg5[%c0_8, %c0_9] : memref<56x128xf32, #tpu.memory_space<vmem>>, vector<56x128xf32>
    tpu.vector_store %arg5[%c0_8, %c0_9], %13 {strides = array<i32>} : memref<56x128xf32, #tpu.memory_space<vmem>>, vector<56x128xf32>,
    return
  }
  func.func @transform_0(%arg0: i32, %arg1: i32) -> (i32, i32) {
    %c0_i32 = arith.constant 0 : i32
    %c0_i32_0 = arith.constant 0 : i32
    return %arg0, %c0_i32 : i32, i32
  }
  func.func @transform_1(%arg0: i32, %arg1: i32) -> (i32, i32) {
    %c0_i32 = arith.constant 0 : i32
    %c0_i32_0 = arith.constant 0 : i32
    return %c0_i32, %arg1 : i32, i32
  }
  func.func @transform_2(%arg0: i32, %arg1: i32) -> (i32, i32) {
    %c0_i32 = arith.constant 0 : i32
    %c0_i32_0 = arith.constant 0 : i32
    return %c0_i32, %arg1 : i32, i32
  }
  func.func @transform_3(%arg0: i32, %arg1: i32) -> (i32, i32) {
    %c0_i32 = arith.constant 0 : i32
    return %arg0, %arg1 : i32, i32
  }
}

</mosaic_0001>

<bundles_post_ra>
// kernel: tpu_custom_call.1
= control target key start
LH: loop header
LB: loop body
LE: loop exit
PB: predicated region body
PF: predicated region fallthrough
CT: control target
= control target key end

     0   :  { %8 = vsyncpa [#allocation3], 0  ;;  %s486_s0 = inlined_call_operand.hbm [shape: bf16[56,128], index: 0, kind: input, shape index: {}]   ;;  %s487_s1 = inlined_call_operand.hbm [shape: bf16[128,128], index: 1, kind: input, shape index: {}]   ;;  %s488_s2 = inlined_call_operand.hbm [shape: f32[3,128], index: 2, kind: input, shape index: {}]   ;;  %s489_s3 = inlined_call_operand.hbm [shape: f32[56,128], index: 3, kind: output, shape index: {}]  }
   0x1   :  { %9 = vsyncpa [#allocation6], 0 }
   0x2   :  { %10 = vsyncpa [#allocation4], 0  ;;  %s446_s12 = smov [#allocation5]   ;;  %s447_s14 = smov [#allocation2]  }
   0x3   :  { %s28_s13 = sshll.u32 %s446_s12, 4  ;;  %s16_s15 = sshll.u32 %s447_s14, 4  ;;  %s29_s13 = int_to_ptr.vmem [resolvable:$true] %s28_s13  ;;  %s17_s15 = int_to_ptr.vmem [resolvable:$true] %s16_s15 }
   0x4   :  { %s368_s16 = scalar_lea.vmem %s29_s13, 1024  ;;  %p373_p1 = scmp.lt.s32.totalorder %s29_s13, %s29_s13 }
   0x5   :  { %p369_p0 = scmp.ne.s32.totalorder %s29_s13, %s368_s16  ;;  %p374_p2 = scmp.lt.s32.totalorder %s368_s16, %s368_s16 }
   0x7   :  { %p375_p3 = por %p374_p2, %p373_p1 }
   0x9   :  { %p376_p4 = pnand %p375_p3, %p369_p0 }
   0xb   :  { %379 = shalt.err (!%p376_p4)
}
   0xc   :  { %s448_s17 = smov 64   ;;  %s449_s18 = smov 4  }
   0xd   :  { %34 = dma.hbm_to_vmem [thread:$0]  %s487_s1, 1024, %s29_s13, [#allocation6], %s448_s17, %s448_s17, %s449_s18  }
   0xe   :  { %s388_s21 = scalar_lea.vmem %s17_s15, 448  ;;  %p393_p6 = scmp.lt.s32.totalorder %s17_s15, %s17_s15 }
   0xf   :  { %p389_p5 = scmp.ne.s32.totalorder %s17_s15, %s388_s21  ;;  %p394_p7 = scmp.lt.s32.totalorder %s388_s21, %s388_s21 }
  0x11   :  { %p395_p8 = por %p394_p7, %p393_p6 }
  0x13   :  { %p396_p9 = pnand %p395_p8, %p389_p5 }
  0x15   :  { %399 = shalt.err (!%p396_p9)
}
  0x16   :  { %22 = dma.hbm_to_vmem [thread:$0]  %s486_s0, 448, %s17_s15, [#allocation3], %s448_s17, %s448_s17, %s449_s18  }
  0x17   :  { %s450_s24 = smov [#allocation7]  }
  0x18   :  { %s41_s25 = sshll.u32 %s450_s24, 4  ;;  %s42_s25 = int_to_ptr.vmem [resolvable:$true] %s41_s25 }
  0x19   :  { %s408_s26 = scalar_lea.vmem %s42_s25, 64  ;;  %p413_p11 = scmp.lt.s32.totalorder %s42_s25, %s42_s25 }
  0x1a   :  { %p409_p10 = scmp.ne.s32.totalorder %s42_s25, %s408_s26  ;;  %p414_p12 = scmp.lt.s32.totalorder %s408_s26, %s408_s26 }
  0x1c   :  { %p415_p13 = por %p414_p12, %p413_p11 }
  0x1e   :  { %p416_p0 = pnand %p415_p13, %p409_p10 }
  0x20   :  { %419 = shalt.err (!%p416_p0)
}
  0x21   :  { %44 = dma.hbm_to_vmem [thread:$0]  %s488_s2, 64, %s42_s25, [#allocation6]  }
  0x22   :  { %440 = dma.done.wait [#allocation3], 448  }
  0x23   :  { %441 = vsyncadd [#allocation3], 4294966848 }
  0x24   :  { %442 = dma.done.wait [#allocation6], 1088  }
  0x25   :  { %443 = vsyncadd [#allocation6], 4294966208  ;;  %v348_v0 = vld [vmem:[#allocation5 + $0x38] sm:$0xff]   ;;  %v349_v1 = vld [vmem:[#allocation5 + $0x30] sm:$0xff]   ;;  %s451_s0 = smov [#allocation8]  }
  0x26   :  { %300 = vmatprep.subr.bf16.mxu0 %v348_v0  ;;  %324 = vmatprep.subr.bf16.mxu1 %v348_v0  ;;  %v350_v2 = vld [vmem:[#allocation5 + $0x28] sm:$0xff]   ;;  %v351_v3 = vld [vmem:[#allocation5 + $0x20] sm:$0xff]   ;;  %v357_v5 = vld [vmem:[#allocation2 + $0x10] sm:$0xff]   ;;  %s260_s2 = sshll.u32 %s451_s0, 4  ;;  %s261_s2 = int_to_ptr.vmem [resolvable:$true] %s260_s2 }
  0x27   :  { %301 = vmatpush3.bf16.msra.mxu0 %v348_v0  ;;  %332 = vmatpush3.bf16.msra.mxu1 %v348_v0  ;;  %v356_v4 = vld [vmem:[#allocation2] sm:$0xff]   ;;  %v352_v6 = vld [vmem:[#allocation5 + $0x18] sm:$0xff]   ;;  %v353_v7 = vld [vmem:[#allocation5 + $0x10] sm:$0xff]   ;;  %s420_s28 = scalar_lea.vmem %s261_s2, 896  ;;  %p425_p2 = scmp.lt.s32.totalorder %s261_s2, %s261_s2 }
  0x28   :  { %302 = vmatprep.subr.bf16.mxu0 %v349_v1  ;;  %325 = vmatprep.subr.bf16.mxu1 %v349_v1  ;;  %v354_v8 = vld [vmem:[#allocation5 + $0x8] sm:$0xff]   ;;  %v355_v9 = vld [vmem:[#allocation5] sm:$0xff]   ;;  %v359_v11 = vld [vmem:[#allocation2 + $0x18] ss:$0 sps:$4 sm:$0xff]   ;;  %p421_p1 = scmp.ne.s32.totalorder %s261_s2, %s420_s28  ;;  %p426_p3 = scmp.lt.s32.totalorder %s420_s28, %s420_s28 }
  0x29   :  { %316 = vmatprep.mubr.bf16.mxu0 %v356_v4  ;;  %320 = vmatprep.mubr.bf16.mxu1 %v357_v5  ;;  %v358_v10 = vld [vmem:[#allocation2 + $0x8] sm:$0xff]   ;;  %v273_v12 = vld [vmem:[#allocation7] ss:$0 sm:$0xff]  ;;  %v286_v17 = vld [vmem:[#allocation7 + $0x1] ss:$0 sm:$0xff] }
  0x2a   :  { %v287_v24 = vld [vmem:[#allocation7 + $0x2] ss:$0 sm:$0xff]  ;;  %p427_p4 = por %p426_p3, %p425_p2 }
  0x2b   :  { %303 = vmatpush3.bf16.msra.mxu0 %v349_v1  ;;  %333 = vmatpush3.bf16.msra.mxu1 %v349_v1 }
  0x2c   :  { %304 = vmatprep.subr.bf16.mxu0 %v350_v2  ;;  %326 = vmatprep.subr.bf16.mxu1 %v350_v2  ;;  %p428_p5 = pnand %p427_p4, %p421_p1 }
  0x2f   :  { %305 = vmatpush3.bf16.msra.mxu0 %v350_v2  ;;  %334 = vmatpush3.bf16.msra.mxu1 %v350_v2 }
  0x30   :  { %306 = vmatprep.subr.bf16.mxu0 %v351_v3  ;;  %327 = vmatprep.subr.bf16.mxu1 %v351_v3 }
  0x33   :  { %307 = vmatpush3.bf16.msra.mxu0 %v351_v3  ;;  %335 = vmatpush3.bf16.msra.mxu1 %v351_v3 }
  0x34   :  { %308 = vmatprep.subr.bf16.mxu0 %v352_v6  ;;  %328 = vmatprep.subr.bf16.mxu1 %v352_v6 }
  0x37   :  { %309 = vmatpush3.bf16.msra.mxu0 %v352_v6  ;;  %336 = vmatpush3.bf16.msra.mxu1 %v352_v6 }
  0x38   :  { %310 = vmatprep.subr.bf16.mxu0 %v353_v7  ;;  %329 = vmatprep.subr.bf16.mxu1 %v353_v7 }
  0x3b   :  { %311 = vmatpush3.bf16.msra.mxu0 %v353_v7  ;;  %337 = vmatpush3.bf16.msra.mxu1 %v353_v7 }
  0x3c   :  { %312 = vmatprep.subr.bf16.mxu0 %v354_v8  ;;  %330 = vmatprep.subr.bf16.mxu1 %v354_v8 }
  0x3f   :  { %313 = vmatpush3.bf16.msra.mxu0 %v354_v8  ;;  %338 = vmatpush3.bf16.msra.mxu1 %v354_v8 }
  0x40   :  { %314 = vmatprep.subr.bf16.mxu0 %v355_v9  ;;  %331 = vmatprep.subr.bf16.mxu1 %v355_v9 }
  0x43   :  { %315 = vmatpush3.bf16.msra.mxu0 %v355_v9  ;;  %339 = vmatpush3.bf16.msra.mxu1 %v355_v9 }
  0x46   :  { %317 = vmatmul.mubr.bf16.vlgmr.msra.gmra.mxu0 %v358_v10  ;;  %321 = vmatmul.mubr.bf16.vlgmr.msra.gmra.mxu1 %v359_v11 }
 0x106   :  { %v318_v13 = vpop.f32.mrf.mxu0  ;;  %v322_v14 = vpop.f32.mrf.mxu1 }
 0x107   :  { %v198_v15 = vadd.f32 %v318_v13, %v273_v12  ;;  %v214_v16 = vadd.f32 %v322_v14, %v273_v12 }
 0x108   :  { %v189_v18 = vpop.f32.mrf.mxu0  ;;  %v205_v19 = vpop.f32.mrf.mxu1 }
 0x109   :  { %v221_v20 = vmax.f32 %v198_v15, 0.0  ;;  %v225_v21 = vmax.f32 %v214_v16, 0.0  ;;  %v190_v22 = vadd.f32 %v273_v12, %v189_v18  ;;  %v206_v23 = vadd.f32 %v273_v12, %v205_v19 }
 0x10a   :  { %v319_v25 = vpop.f32.mrf.mxu0  ;;  %v323_v26 = vpop.f32.mrf.mxu1 }
 0x10b   :  { %v232_v27 = vmul.f32 %v286_v17, %v221_v20  ;;  %v236_v28 = vmul.f32 %v286_v17, %v225_v21  ;;  %v219_v29 = vmax.f32 %v190_v22, 0.0  ;;  %v223_v30 = vmax.f32 %v206_v23, 0.0 }
 0x10c   :  { %v201_v31 = vadd.f32 %v319_v25, %v273_v12  ;;  %v192_v32 = vpop.f32.mrf.mxu0  ;;  %v208_v33 = vpop.f32.mrf.mxu1 }
 0x10d   :  { %v243_v34 = vadd.f32 %v287_v24, %v232_v27  ;;  %v247_v35 = vadd.f32 %v287_v24, %v236_v28  ;;  %v230_v36 = vmul.f32 %v286_v17, %v219_v29  ;;  %v234_v37 = vmul.f32 %v286_v17, %v223_v30 }
 0x10e   :  { %v222_v38 = vmax.f32 %v201_v31, 0.0  ;;  %v193_v39 = vadd.f32 %v273_v12, %v192_v32  ;;  %v209_v40 = vadd.f32 %v273_v12, %v208_v33 }
 0x10f   :  { %250 = vst [vmem:[#allocation8 + $0x10] sm:$0xff] %v243_v34  ;;  %254 = vst [vmem:[#allocation8 + $0x30] sm:$0xff] %v247_v35  ;;  %v241_v41 = vadd.f32 %v287_v24, %v230_v36  ;;  %v245_v42 = vadd.f32 %v287_v24, %v234_v37 }
 0x110   :  { %v233_v43 = vmul.f32 %v286_v17, %v222_v38  ;;  %v220_v44 = vmax.f32 %v193_v39, 0.0  ;;  %v224_v45 = vmax.f32 %v209_v40, 0.0 }
 0x111   :  { %248 = vst [vmem:[#allocation8] sm:$0xff] %v241_v41  ;;  %252 = vst [vmem:[#allocation8 + $0x20] sm:$0xff] %v245_v42 }
 0x112   :  { %v244_v46 = vadd.f32 %v287_v24, %v233_v43  ;;  %v231_v47 = vmul.f32 %v286_v17, %v220_v44  ;;  %v235_v48 = vmul.f32 %v286_v17, %v224_v45 }
 0x114   :  { %251 = vst [vmem:[#allocation8 + $0x18] sm:$0xff] %v244_v46  ;;  %v242_v49 = vadd.f32 %v287_v24, %v231_v47  ;;  %v246_v50 = vadd.f32 %v287_v24, %v235_v48 }
 0x116   :  { %249 = vst [vmem:[#allocation8 + $0x8] sm:$0xff] %v242_v49  ;;  %253 = vst [vmem:[#allocation8 + $0x28] sm:$0xff] %v246_v50 }
 0x117   :  { %431 = shalt.err (!%p428_p5)
}
 0x118   :  { %s452_s29 = smov 128   ;;  %s453_s30 = smov 8  }
 0x119   :  { %266 = dma.vmem_to_hbm [thread:$0]  %s261_s2, 896, %s489_s3, [#allocation4], %s452_s29, %s452_s29, %s453_s30  }
 0x11a   :  { %444 = dma.done.wait [#allocation4], 896  }
 0x11b   :  { %445 = vsyncadd [#allocation4], 4294966400 }
 0x11c   :  { %270 = vsyncpa [#allocation3], 1 }
 0x11d   :  { %271 = vsyncpa [#allocation6], 1 }
 0x11e   :  { %272 = vsyncpa [#allocation4], 1 }

</bundles_post_ra>
